<compile_context>
chip_gen: v5e
topology: v5e:2x2
jax: 0.10.0
libtpu: 0.0.40
codegen_flags: <defaults>
</compile_context>

<pallas_src>
import jax
import jax.numpy as jnp
from jax import lax
from jax.experimental import pallas as pl
from jax.experimental.pallas import tpu as pltpu


# ----------------------------- configuration ------------------------------ #
B = 2             # batch
C = 4             # input channels
H = W = 16        # spatial
PATCH = 4         # patch size
P = (H // PATCH) * (W // PATCH)     # 16 patches per image
PATCH_DIM = C * PATCH * PATCH       # 64
FLATTENED_DIM = 1000                # self.flattened_dim
EMBEDDING_DIM = 20                  # self.embedding_dim
N_CLASSES = 100                     # args['dataset'] == 'CIFAR100'

# padded sizes
FD_PAD = 1024                       # 1000 -> 1024 lanes (backbone features)
ED_PAD = 32                         # 20 -> 32 sublanes (bf16 packing of w1^T)
NC_PAD = 128                        # 100 -> 128 lanes (logits)

# bias layout: [ b_body(1024) | b1(128 slot, 20 real) | b2(128 slot, 100 real) ]
B1_OFF = FD_PAD                     # 1024
B2_OFF = FD_PAD + 128               # 1152
BIAS_LEN = FD_PAD + 128 + 128       # 1280


# ------------------------------ Pallas kernel ------------------------------ #
def vit_head_kernel(pooled_ref,   # [TB, PATCH_DIM] bf16  (mean-pooled patches)
                    wbody_ref,    # [PATCH_DIM, FD_PAD] bf16 (folded backbone)
                    w1t_ref,      # [ED_PAD, FD_PAD]    bf16 (fc1 weight, transposed)
                    w2_ref,       # [ED_PAD, NC_PAD]    bf16 (fc2 weight)
                    bias_ref,     # [1, BIAS_LEN]       f32
                    logits_ref,   # out: [TB, NC_PAD]   f32
                    e1_ref):      # out: [TB, ED_PAD]   f32
    b_body = bias_ref[:, :FD_PAD]                      # [1, 1024]
    b_1 = bias_ref[:, B1_OFF:B1_OFF + ED_PAD]          # [1, 32]
    b_2 = bias_ref[:, B2_OFF:B2_OFF + NC_PAD]          # [1, 128]

    # folded synthetic backbone: pooled patches -> 1000(->1024)-dim features
    feat = jnp.dot(pooled_ref[...], wbody_ref[...],
                   preferred_element_type=jnp.float32) + b_body       # [TB, 1024]

    # fc1 with transposed/trimmed weight (NT matmul): h1 = feat @ w1^T + b1
    h1 = lax.dot_general(feat.astype(jnp.bfloat16), w1t_ref[...],
                         dimension_numbers=(((1,), (1,)), ((), ())),
                         preferred_element_type=jnp.float32) + b_1    # [TB, 32]
    e1 = jnp.maximum(h1, 0.0)                                         # ReLU

    # fc2: logits = e1 @ w2 + b2
    logits = jnp.dot(e1.astype(jnp.bfloat16), w2_ref[...],
                     preferred_element_type=jnp.float32) + b_2        # [TB, 128]

    logits_ref[...] = logits
    e1_ref[...] = e1


# ------------------------------- wrapper ----------------------------------- #
def _round_up(x, m):
    return (x + m - 1) // m * m


def _prep_pooled(x):
    """[B, C, H, W] -> mean-pooled patch vectors [B, PATCH_DIM] (XLA glue)."""
    b = x.shape[0]
    p = x.reshape(b, C, H // PATCH, PATCH, W // PATCH, PATCH)
    p = p.transpose(0, 2, 4, 1, 3, 5).reshape(b, P, PATCH_DIM)
    return jnp.mean(p, axis=1)                                        # [B, 64] f32


@jax.jit
def vit_forward(x, fp):
    """x: [B, C, H, W] f32.  fp: folded params.  Returns (logits [B,100], e1 [B,20])."""
    b = x.shape[0]
    pooled = _prep_pooled(x)

    # batch tiling: one grid axis, weights resident across steps
    tb = min(128, _round_up(b, 8))
    b_pad = _round_up(b, tb)
    pooled_pad = jnp.zeros((b_pad, PATCH_DIM), jnp.bfloat16).at[:b].set(
        pooled.astype(jnp.bfloat16))

    cost = pl.CostEstimate(
        flops=2 * b_pad * (PATCH_DIM * FD_PAD + FD_PAD * ED_PAD + ED_PAD * NC_PAD),
        transcendentals=0,
        bytes_accessed=(pooled_pad.size * 2 + fp['wbody'].size * 2
                        + fp['w1t'].size * 2 + fp['w2'].size * 2
                        + fp['bias'].size * 4 + b_pad * (NC_PAD + ED_PAD) * 4))

    const2 = lambda i: (0, 0)          # weights/bias: same block every step -> resident
    logits_pad, e1_pad = pl.pallas_call(
        vit_head_kernel,
        grid=(b_pad // tb,),
        in_specs=[
            pl.BlockSpec((tb, PATCH_DIM), lambda i: (i, 0)),
            pl.BlockSpec((PATCH_DIM, FD_PAD), const2),
            pl.BlockSpec((ED_PAD, FD_PAD), const2),
            pl.BlockSpec((ED_PAD, NC_PAD), const2),
            pl.BlockSpec((1, BIAS_LEN), const2),
        ],
        out_specs=(pl.BlockSpec((tb, NC_PAD), lambda i: (i, 0)),
                   pl.BlockSpec((tb, ED_PAD), lambda i: (i, 0))),
        out_shape=(jax.ShapeDtypeStruct((b_pad, NC_PAD), jnp.float32),
                   jax.ShapeDtypeStruct((b_pad, ED_PAD), jnp.float32)),
        compiler_params=pltpu.CompilerParams(dimension_semantics=("parallel",)),
        cost_estimate=cost,
    )(pooled_pad, fp['wbody'], fp['w1t'], fp['w2'], fp['bias'])

    return logits_pad[:b, :N_CLASSES], e1_pad[:b, :EMBEDDING_DIM]


# ------------------------- deterministic parameters ------------------------ #
def init_params(key):
    """'Raw' params matching the module structure (synthetic backbone + head)."""
    ks = jax.random.split(key, 8)
    s = 0.02
    return {
        'wp':    s * jax.random.normal(ks[0], (PATCH_DIM, 64), jnp.float32),
        'bp':    s * jax.random.normal(ks[1], (1, 64), jnp.float32),
        'wproj': s * jax.random.normal(ks[2], (64, FLATTENED_DIM), jnp.float32),
        'bproj': s * jax.random.normal(ks[3], (1, FLATTENED_DIM), jnp.float32),
        'w1':    s * jax.random.normal(ks[4], (FLATTENED_DIM, EMBEDDING_DIM), jnp.float32),
        'b1':    s * jax.random.normal(ks[5], (1, EMBEDDING_DIM), jnp.float32),
        'w2':    s * jax.random.normal(ks[6], (EMBEDDING_DIM, N_CLASSES), jnp.float32),
        'b2':    s * jax.random.normal(ks[7], (1, N_CLASSES), jnp.float32),
    }


def fold_params(raw):
    """One-time offline fold + pad + transpose/trim + bf16 cast of the weights."""
    wbody = raw['wp'] @ raw['wproj']                       # [64, 1000]
    bbody = raw['bp'] @ raw['wproj'] + raw['bproj']        # [1, 1000]

    wbody_p = jnp.zeros((PATCH_DIM, FD_PAD), jnp.float32).at[:, :FLATTENED_DIM].set(wbody)
    # fc1 stored transposed & trimmed: [ED_PAD, FD_PAD] = [32, 1024]  (real: 20x1000)
    w1t_p = jnp.zeros((ED_PAD, FD_PAD), jnp.float32).at[
        :EMBEDDING_DIM, :FLATTENED_DIM].set(raw['w1'].T)
    # fc2 trimmed: [ED_PAD, NC_PAD] = [32, 128]  (real: 20x100)
    w2_p = jnp.zeros((ED_PAD, NC_PAD), jnp.float32).at[
        :EMBEDDING_DIM, :N_CLASSES].set(raw['w2'])

    bias = jnp.zeros((1, BIAS_LEN), jnp.float32)
    bias = bias.at[:, :FLATTENED_DIM].set(bbody)
    bias = bias.at[:, B1_OFF:B1_OFF + EMBEDDING_DIM].set(raw['b1'])
    bias = bias.at[:, B2_OFF:B2_OFF + N_CLASSES].set(raw['b2'])

    return {'wbody': wbody_p.astype(jnp.bfloat16),
            'w1t': w1t_p.astype(jnp.bfloat16),
            'w2': w2_p.astype(jnp.bfloat16),
            'bias': bias}


# ----------------------------------- main ----------------------------------- #
if __name__ == "__main__":
    key = jax.random.PRNGKey(0)
    k_x, k_p = jax.random.split(key)
    x = jax.random.normal(k_x, (B, C, H, W), jnp.float32)
    raw = init_params(k_p)
    fp = fold_params(raw)

    logits, e1 = vit_forward(x, fp)
    jax.block_until_ready((logits, e1))

    assert logits.shape == (B, N_CLASSES) and e1.shape == (B, EMBEDDING_DIM)
    assert bool(jnp.all(e1 >= 0.0))                 # relu output
    assert bool(jnp.all(jnp.isfinite(logits)))

    # --- reference 1: identical folded / padded / bf16 math in plain JAX ---
    pooled = _prep_pooled(x).astype(jnp.bfloat16)
    bias = fp['bias']
    feat_r = jnp.dot(pooled, fp['wbody'],
                     preferred_element_type=jnp.float32) + bias[:, :FD_PAD]
    h1_r = lax.dot_general(feat_r.astype(jnp.bfloat16), fp['w1t'],
                           dimension_numbers=(((1,), (1,)), ((), ())),
                           preferred_element_type=jnp.float32) + bias[:, B1_OFF:B1_OFF + ED_PAD]
    e1_r = jnp.maximum(h1_r, 0.0)
    logit_r = (jnp.dot(e1_r.astype(jnp.bfloat16), fp['w2'],
                       preferred_element_type=jnp.float32)
               + bias[:, B2_OFF:B2_OFF + NC_PAD])
    assert jnp.allclose(e1, e1_r[:, :EMBEDDING_DIM], atol=5e-4, rtol=1e-2)
    assert jnp.allclose(logits, logit_r[:, :N_CLASSES], atol=5e-4, rtol=1e-2)

    # --- reference 2: original (unfolded, f32) module semantics, loose tol ---
    p = x.reshape(B, C, H // PATCH, PATCH, W // PATCH, PATCH)
    patches = p.transpose(0, 2, 4, 1, 3, 5).reshape(B, P, PATCH_DIM)
    emb = jnp.einsum('bpd,de->bpe', patches, raw['wp']) + raw['bp']
    feat2 = jnp.mean(emb, axis=1) @ raw['wproj'] + raw['bproj']
    e1_ref2 = jnp.maximum(feat2 @ raw['w1'] + raw['b1'], 0.0)
    logit_ref2 = e1_ref2 @ raw['w2'] + raw['b2']
    assert jnp.allclose(e1, e1_ref2, atol=5e-3, rtol=5e-2)
    assert jnp.allclose(logits, logit_ref2, atol=5e-3, rtol=5e-2)

    print("KERNEL_OK")
</pallas_src>

<mosaic_0001>
module attributes {stable_mosaic.version = 11 : i64} {
  func.func @vit_head_kernel(%arg0: i32, %arg1: memref<8x64xbf16, #tpu.memory_space<vmem>>, %arg2: memref<64x1024xbf16, #tpu.memory_space<vmem>>, %arg3: memref<32x1024xbf16, #tpu.memory_space<vmem>>, %arg4: memref<32x128xbf16, #tpu.memory_space<vmem>>, %arg5: memref<1x1280xf32, #tpu.memory_space<vmem>>, %arg6: memref<8x128xf32, #tpu.memory_space<vmem>>, %arg7: memref<8x32xf32, #tpu.memory_space<vmem>>) attributes {dimension_semantics = [#tpu.dimension_semantics<parallel>], iteration_bounds = array<i64: 1>, scalar_prefetch = 0 : i64, scratch_operands = 0 : i64, tpu.core_type = #tpu.core_type<tc>, window_params = [{transform_indices = @transform_0, window_bounds = array<i64: 8, 64>}, {pipeline_mode = #tpu.pipeline_mode<synchronous>, transform_indices = @transform_1, window_bounds = array<i64: 64, 1024>}, {pipeline_mode = #tpu.pipeline_mode<synchronous>, transform_indices = @transform_2, window_bounds = array<i64: 32, 1024>}, {pipeline_mode = #tpu.pipeline_mode<synchronous>, transform_indices = @transform_3, window_bounds = array<i64: 32, 128>}, {pipeline_mode = #tpu.pipeline_mode<synchronous>, transform_indices = @transform_4, window_bounds = array<i64: 1, 1280>}, {transform_indices = @transform_5, window_bounds = array<i64: 8, 128>}, {transform_indices = @transform_6, window_bounds = array<i64: 8, 32>}]} {
    %c0 = arith.constant 0 : index
    %c0_0 = arith.constant 0 : index
    %0 = vector.load %arg5[%c0, %c0_0] : memref<1x1280xf32, #tpu.memory_space<vmem>>, vector<1x1024xf32>
    %c0_1 = arith.constant 0 : index
    %c1024 = arith.constant 1024 : index
    %1 = vector.load %arg5[%c0_1, %c1024] : memref<1x1280xf32, #tpu.memory_space<vmem>>, vector<1x32xf32>
    %c0_2 = arith.constant 0 : index
    %c1152 = arith.constant 1152 : index
    %2 = vector.load %arg5[%c0_2, %c1152] : memref<1x1280xf32, #tpu.memory_space<vmem>>, vector<1x128xf32>
    %c0_3 = arith.constant 0 : index
    %c0_4 = arith.constant 0 : index
    %3 = vector.load %arg1[%c0_3, %c0_4] : memref<8x64xbf16, #tpu.memory_space<vmem>>, vector<8x64xbf16>
    %c0_5 = arith.constant 0 : index
    %c0_6 = arith.constant 0 : index
    %4 = vector.load %arg2[%c0_5, %c0_6] : memref<64x1024xbf16, #tpu.memory_space<vmem>>, vector<64x1024xbf16>
    %cst = arith.constant dense<0.000000e+00> : vector<8x1024xf32>
    %5 = tpu.matmul %3, %4, %cst {dimension_numbers = #tpu.dot_dimension_numbers<[1], [0], [0], [1], [0, 0, 1, 1], [], []>} : vector<8x64xbf16>, vector<64x1024xbf16>, vector<8x1024xf32> -> vector<8x1024xf32>
    %6 = vector.broadcast %0 : vector<1x1024xf32> to vector<8x1024xf32>
    %7 = arith.addf %5, %6 : vector<8x1024xf32>
    %8 = arith.truncf %7 : vector<8x1024xf32> to vector<8x1024xbf16>
    %c0_7 = arith.constant 0 : index
    %c0_8 = arith.constant 0 : index
    %9 = vector.load %arg3[%c0_7, %c0_8] : memref<32x1024xbf16, #tpu.memory_space<vmem>>, vector<32x1024xbf16>
    %cst_9 = arith.constant dense<0.000000e+00> : vector<8x32xf32>
    %10 = tpu.matmul %8, %9, %cst_9 {dimension_numbers = #tpu.dot_dimension_numbers<[1], [1], [0], [0], [0, 0, 1, 0], [], []>} : vector<8x1024xbf16>, vector<32x1024xbf16>, vector<8x32xf32> -> vector<8x32xf32>
    %11 = vector.broadcast %1 : vector<1x32xf32> to vector<8x32xf32>
    %12 = arith.addf %10, %11 : vector<8x32xf32>
    %cst_10 = arith.constant 0.000000e+00 : f32
    %13 = vector.broadcast %cst_10 : f32 to vector<8x32xf32>
    %14 = arith.maximumf %12, %13 : vector<8x32xf32>
    %15 = arith.truncf %14 : vector<8x32xf32> to vector<8x32xbf16>
    %c0_11 = arith.constant 0 : index
    %c0_12 = arith.constant 0 : index
    %16 = vector.load %arg4[%c0_11, %c0_12] : memref<32x128xbf16, #tpu.memory_space<vmem>>, vector<32x128xbf16>
    %cst_13 = arith.constant dense<0.000000e+00> : vector<8x128xf32>
    %17 = tpu.matmul %15, %16, %cst_13 {dimension_numbers = #tpu.dot_dimension_numbers<[1], [0], [0], [1], [0, 0, 1, 1], [], []>} : vector<8x32xbf16>, vector<32x128xbf16>, vector<8x128xf32> -> vector<8x128xf32>
    %18 = vector.broadcast %2 : vector<1x128xf32> to vector<8x128xf32>
    %19 = arith.addf %17, %18 : vector<8x128xf32>
    %c0_14 = arith.constant 0 : index
    %c0_15 = arith.constant 0 : index
    %20 = vector.load %arg6[%c0_14, %c0_15] : memref<8x128xf32, #tpu.memory_space<vmem>>, vector<8x128xf32>
    tpu.vector_store %arg6[%c0_14, %c0_15], %19 {strides = array<i32>} : memref<8x128xf32, #tpu.memory_space<vmem>>, vector<8x128xf32>,
    %c0_16 = arith.constant 0 : index
    %c0_17 = arith.constant 0 : index
    %21 = vector.load %arg7[%c0_16, %c0_17] : memref<8x32xf32, #tpu.memory_space<vmem>>, vector<8x32xf32>
    tpu.vector_store %arg7[%c0_16, %c0_17], %14 {strides = array<i32>} : memref<8x32xf32, #tpu.memory_space<vmem>>, vector<8x32xf32>,
    return
  }
  func.func @transform_0(%arg0: i32) -> (i32, i32) {
    %c0_i32 = arith.constant 0 : i32
    %c0_i32_0 = arith.constant 0 : i32
    return %arg0, %c0_i32 : i32, i32
  }
  func.func @transform_1(%arg0: i32) -> (i32, i32) {
    %c0_i32 = arith.constant 0 : i32
    %c0_i32_0 = arith.constant 0 : i32
    %c0_i32_1 = arith.constant 0 : i32
    return %c0_i32, %c0_i32_0 : i32, i32
  }
  func.func @transform_2(%arg0: i32) -> (i32, i32) {
    %c0_i32 = arith.constant 0 : i32
    %c0_i32_0 = arith.constant 0 : i32
    %c0_i32_1 = arith.constant 0 : i32
    return %c0_i32, %c0_i32_0 : i32, i32
  }
  func.func @transform_3(%arg0: i32) -> (i32, i32) {
    %c0_i32 = arith.constant 0 : i32
    %c0_i32_0 = arith.constant 0 : i32
    %c0_i32_1 = arith.constant 0 : i32
    return %c0_i32, %c0_i32_0 : i32, i32
  }
  func.func @transform_4(%arg0: i32) -> (i32, i32) {
    %c0_i32 = arith.constant 0 : i32
    %c0_i32_0 = arith.constant 0 : i32
    %c0_i32_1 = arith.constant 0 : i32
    return %c0_i32, %c0_i32_0 : i32, i32
  }
  func.func @transform_5(%arg0: i32) -> (i32, i32) {
    %c0_i32 = arith.constant 0 : i32
    %c0_i32_0 = arith.constant 0 : i32
    return %arg0, %c0_i32 : i32, i32
  }
  func.func @transform_6(%arg0: i32) -> (i32, i32) {
    %c0_i32 = arith.constant 0 : i32
    %c0_i32_0 = arith.constant 0 : i32
    return %arg0, %c0_i32 : i32, i32
  }
}

</mosaic_0001>

<bundles_post_ra>
// kernel: vit_forward.1
= control target key start
LH: loop header
LB: loop body
LE: loop exit
PB: predicated region body
PF: predicated region fallthrough
CT: control target
= control target key end

     0   :  { %vm236_vm0 = vcmask 523264   ;;  %vm576_vm1 = vcmask 261120   ;;  %s1229_s1 = inlined_call_operand.vmem [shape: bf16[64,1024], index: 1, kind: input, shape index: {}]   ;;  %s1230_s0 = inlined_call_operand.vmem [shape: bf16[8,64], index: 0, kind: input, shape index: {}]   ;;  %s1231_s2 = inlined_call_operand.vmem [shape: bf16[32,1024], index: 2, kind: input, shape index: {}]   ;;  %s1232_s4 = inlined_call_operand.vmem [shape: f32[1,1280], index: 4, kind: input, shape index: {}]   ;;  %s1233_s3 = inlined_call_operand.vmem [shape: bf16[32,128], index: 3, kind: input, shape index: {}]   ;;  %s1234_s6 = inlined_call_operand.vmem [shape: f32[8,32], index: 6, kind: output, shape index: {1}]   ;;  %s1235_s5 = inlined_call_operand.vmem [shape: f32[8,128], index: 5, kind: output, shape index: {0}]  }
   0x1   :  { %v701_v0 = vld [vmem:[%s1229_s1 + $0xc0] sm:$0xf]  ;;  %v709_v2 = vld [vmem:[%s1229_s1 + $0xc8] sm:$0xf]  ;;  %v837_v5 = vld [vmem:[%s1229_s1 + $0xcc] sm:$0xf] }
   0x2   :  { %v840_v1 = vld [vmem:[%s1229_s1 + $0xdc] sm:$0xf0]  ;;  %v841_v4 = vld [vmem:[%s1229_s1 + $0xe4] sm:$0xf0]  ;;  %v711_v6 = vld [vmem:[%s1229_s1 + $0xe8] sm:$0xf0] }
   0x3   :  { %v702_v3 = vor.u32 %v840_v1, %v701_v0  ;;  %v710_v7 = vor.u32 %v841_v4, %v709_v2  ;;  %v714_v8 = vor.u32 %v837_v5, %v711_v6  ;;  %v836_v9 = vld [vmem:[%s1229_s1 + $0xc4] sm:$0xf]  ;;  %v669_v11 = vld [vmem:[%s1229_s1 + $0x80] sm:$0xf]  ;;  %v677_v14 = vld [vmem:[%s1229_s1 + $0x88] sm:$0xf] }
   0x4   :  { %v703_v10 = vld [vmem:[%s1229_s1 + $0xe0] sm:$0xf0]  ;;  %v832_v13 = vld [vmem:[%s1229_s1 + $0x9c] sm:$0xf0]  ;;  %v833_v15 = vld [vmem:[%s1229_s1 + $0xa4] sm:$0xf0] }
   0x5   :  { %244 = vmatpush.bf16.msra.mxu0 %v702_v3  ;;  %v706_v12 = vor.u32 %v836_v9, %v703_v10  ;;  %270 = vmatpush.bf16.msra.mxu2 %v710_v7  ;;  %v670_v16 = vor.u32 %v832_v13, %v669_v11  ;;  %v678_v17 = vor.u32 %v833_v15, %v677_v14  ;;  %v829_v18 = vld [vmem:[%s1229_s1 + $0x8c] sm:$0xf]  ;;  %v828_v20 = vld [vmem:[%s1229_s1 + $0x84] sm:$0xf]  ;;  %v637_v23 = vld [vmem:[%s1229_s1 + $0x40] sm:$0xf] }
   0x6   :  { %283 = vmatpush.bf16.msra.mxu3 %v714_v8  ;;  %v679_v19 = vld [vmem:[%s1229_s1 + $0xa8] sm:$0xf0]  ;;  %v671_v22 = vld [vmem:[%s1229_s1 + $0xa0] sm:$0xf0]  ;;  %v824_v24 = vld [vmem:[%s1229_s1 + $0x5c] sm:$0xf0] }
   0x7   :  { %257 = vmatpush.bf16.msra.mxu1 %v706_v12  ;;  %v682_v21 = vor.u32 %v829_v18, %v679_v19  ;;  %v674_v25 = vor.u32 %v828_v20, %v671_v22  ;;  %v645_v26 = vld [vmem:[%s1229_s1 + $0x48] sm:$0xf]  ;;  %v821_v28 = vld [vmem:[%s1229_s1 + $0x4c] sm:$0xf]  ;;  %v638_v29 = vor.u32 %v824_v24, %v637_v23  ;;  %v820_v31 = vld [vmem:[%s1229_s1 + $0x44] sm:$0xf] }
   0x8   :  { %v825_v27 = vld [vmem:[%s1229_s1 + $0x64] sm:$0xf0]  ;;  %v647_v30 = vld [vmem:[%s1229_s1 + $0x68] sm:$0xf0]  ;;  %v639_v32 = vld [vmem:[%s1229_s1 + $0x60] sm:$0xf0] }
   0x9   :  { %245 = vmatpush.bf16.msra.mxu0 %v670_v16  ;;  %271 = vmatpush.bf16.msra.mxu2 %v678_v17  ;;  %v646_v33 = vor.u32 %v825_v27, %v645_v26  ;;  %v650_v34 = vor.u32 %v821_v28, %v647_v30  ;;  %v605_v35 = vld [vmem:[%s1229_s1] sm:$0xf]  ;;  %v613_v37 = vld [vmem:[%s1229_s1 + $0x8] sm:$0xf]  ;;  %v642_v38 = vor.u32 %v820_v31, %v639_v32  ;;  %v813_v40 = vld [vmem:[%s1229_s1 + $0xc] sm:$0xf] }
   0xa   :  { %284 = vmatpush.bf16.msra.mxu3 %v682_v21  ;;  %v816_v36 = vld [vmem:[%s1229_s1 + $0x1c] sm:$0xf0]  ;;  %v817_v39 = vld [vmem:[%s1229_s1 + $0x24] sm:$0xf0]  ;;  %v615_v41 = vld [vmem:[%s1229_s1 + $0x28] sm:$0xf0] }
   0xb   :  { %258 = vmatpush.bf16.msra.mxu1 %v674_v25  ;;  %v812_v42 = vld [vmem:[%s1229_s1 + $0x4] sm:$0xf]  ;;  %v606_v44 = vor.u32 %v816_v36, %v605_v35  ;;  %v725_v45 = vld [vmem:[%s1229_s1 + $0xd8] sm:$0xf]  ;;  %v614_v47 = vor.u32 %v817_v39, %v613_v37  ;;  %v618_v48 = vor.u32 %v813_v40, %v615_v41  ;;  %v839_v49 = vld [vmem:[%s1229_s1 + $0xdc] sm:$0xf] }
   0xc   :  { %v607_v43 = vld [vmem:[%s1229_s1 + $0x20] sm:$0xf0]  ;;  %v843_v46 = vld [vmem:[%s1229_s1 + $0xf4] sm:$0xf0]  ;;  %v727_v50 = vld [vmem:[%s1229_s1 + $0xf8] sm:$0xf0] }
   0xd   :  { %246 = vmatpush.bf16.msra.mxu0 %v638_v29  ;;  %272 = vmatpush.bf16.msra.mxu2 %v646_v33  ;;  %v610_v51 = vor.u32 %v812_v42, %v607_v43  ;;  %v726_v52 = vor.u32 %v843_v46, %v725_v45  ;;  %v717_v53 = vld [vmem:[%s1229_s1 + $0xd0] sm:$0xf]  ;;  %v838_v55 = vld [vmem:[%s1229_s1 + $0xd4] sm:$0xf]  ;;  %v730_v56 = vor.u32 %v839_v49, %v727_v50  ;;  %v693_v58 = vld [vmem:[%s1229_s1 + $0x98] sm:$0xf] }
   0xe   :  { %285 = vmatpush.bf16.msra.mxu3 %v650_v34  ;;  %v842_v54 = vld [vmem:[%s1229_s1 + $0xec] sm:$0xf0]  ;;  %v719_v57 = vld [vmem:[%s1229_s1 + $0xf0] sm:$0xf0]  ;;  %v835_v59 = vld [vmem:[%s1229_s1 + $0xb4] sm:$0xf0] }
   0xf   :  { %259 = vmatpush.bf16.msra.mxu1 %v642_v38  ;;  %v1028_v60 = vld [vmem:[%s1230_s0] sm:$0xf]  ;;  %v831_v61 = vld [vmem:[%s1229_s1 + $0x9c] sm:$0xf]  ;;  %v718_v63 = vor.u32 %v842_v54, %v717_v53  ;;  %v722_v0 = vor.u32 %v838_v55, %v719_v57  ;;  %v694_v1 = vor.u32 %v835_v59, %v693_v58  ;;  %v685_v2 = vld [vmem:[%s1229_s1 + $0x90] sm:$0xf] }
  0x10   :  { %v695_v62 = vld [vmem:[%s1229_s1 + $0xb8] sm:$0xf0]  ;;  %v834_v3 = vld [vmem:[%s1229_s1 + $0xac] sm:$0xf0]  ;;  %v830_v4 = vld [vmem:[%s1229_s1 + $0x94] sm:$0xf] }
  0x11   :  { %247 = vmatpush.bf16.msra.mxu0 %v606_v44  ;;  %273 = vmatpush.bf16.msra.mxu2 %v614_v47  ;;  %v698_v5 = vor.u32 %v831_v61, %v695_v62  ;;  %v687_v6 = vld [vmem:[%s1229_s1 + $0xb0] sm:$0xf0]  ;;  %v661_v7 = vld [vmem:[%s1229_s1 + $0x58] sm:$0xf]  ;;  %v823_v9 = vld [vmem:[%s1229_s1 + $0x5c] sm:$0xf]  ;;  %v686_v11 = vor.u32 %v834_v3, %v685_v2 }
  0x12   :  { %286 = vmatpush.bf16.msra.mxu3 %v618_v48  ;;  %v827_v8 = vld [vmem:[%s1229_s1 + $0x74] sm:$0xf0]  ;;  %v663_v10 = vld [vmem:[%s1229_s1 + $0x78] sm:$0xf0]  ;;  %v653_v12 = vld [vmem:[%s1229_s1 + $0x50] sm:$0xf]  ;;  %v690_v13 = vor.u32 %v830_v4, %v687_v6 }
  0x13   :  { %260 = vmatpush.bf16.msra.mxu1 %v610_v51  ;;  %v662_v14 = vor.u32 %v827_v8, %v661_v7  ;;  %v826_v15 = vld [vmem:[%s1229_s1 + $0x6c] sm:$0xf0]  ;;  %v822_v16 = vld [vmem:[%s1229_s1 + $0x54] sm:$0xf]  ;;  %v666_v18 = vor.u32 %v823_v9, %v663_v10  ;;  %v629_v19 = vld [vmem:[%s1229_s1 + $0x18] sm:$0xf] }
  0x14   :  { %731 = vmatmul.msk.bf16.vlgmr.msra.gmra.mxu0 %vm236_vm0, %v1028_v60  ;;  %733 = vmatmul.msk.bf16.vlgmr.msra.gmra.mxu2 %vm236_vm0, %v1028_v60  ;;  %v655_v17 = vld [vmem:[%s1229_s1 + $0x70] sm:$0xf0]  ;;  %v819_v20 = vld [vmem:[%s1229_s1 + $0x34] sm:$0xf0]  ;;  %v815_v21 = vld [vmem:[%s1229_s1 + $0x1c] sm:$0xf]  ;;  %v654_v26 = vor.u32 %v826_v15, %v653_v12 }
  0x15   :  { %322 = vmatpush.bf16.msrb.mxu2 %v726_v52  ;;  %734 = vmatmul.msk.bf16.vlgmr.msra.gmra.mxu3 %vm236_vm0, %v1028_v60  ;;  %v621_v22 = vld [vmem:[%s1229_s1 + $0x10] sm:$0xf]  ;;  %v631_v23 = vld [vmem:[%s1229_s1 + $0x38] sm:$0xf0]  ;;  %v781_v24 = vld [vmem:[%s1231_s2 + $0x48] sm:$0xf]  ;;  %v658_v30 = vor.u32 %v822_v16, %v655_v17  ;;  %v630_v31 = vor.u32 %v819_v20, %v629_v19 }
  0x16   :  { %335 = vmatpush.bf16.msrb.mxu3 %v730_v56  ;;  %296 = vmatpush.bf16.msrb.mxu0 %v718_v63  ;;  %v857_v25 = vld [vmem:[%s1231_s2 + $0x64] sm:$0xf0]  ;;  %v818_v27 = vld [vmem:[%s1229_s1 + $0x2c] sm:$0xf0]  ;;  %v853_v28 = vld [vmem:[%s1231_s2 + $0x4c] sm:$0xf]  ;;  %v634_v33 = vor.u32 %v815_v21, %v631_v23 }
  0x17   :  { %732 = vmatmul.msk.bf16.vlgmr.msra.gmra.mxu1 %vm236_vm0, %v1028_v60  ;;  %v783_v29 = vld [vmem:[%s1231_s2 + $0x68] sm:$0xf0]  ;;  %v814_v32 = vld [vmem:[%s1229_s1 + $0x14] sm:$0xf]  ;;  %v773_v35 = vld [vmem:[%s1231_s2 + $0x40] sm:$0xf]  ;;  %v782_v37 = vor.u32 %v857_v25, %v781_v24  ;;  %v622_v41 = vor.u32 %v818_v27, %v621_v22 }
  0x18   :  { %309 = vmatpush.bf16.msrb.mxu1 %v722_v0  ;;  %v623_v34 = vld [vmem:[%s1229_s1 + $0x30] sm:$0xf0]  ;;  %v856_v36 = vld [vmem:[%s1231_s2 + $0x5c] sm:$0xf0]  ;;  %v852_v38 = vld [vmem:[%s1231_s2 + $0x44] sm:$0xf]  ;;  %v786_v40 = vor.u32 %v853_v28, %v783_v29 }
  0x19   :  { %323 = vmatpush.bf16.msrb.mxu2 %v694_v1  ;;  %v775_v39 = vld [vmem:[%s1231_s2 + $0x60] sm:$0xf0]  ;;  %v626_v42 = vor.u32 %v814_v32, %v623_v34  ;;  %v774_v43 = vor.u32 %v856_v36, %v773_v35  ;;  %v741_v45 = vld [vmem:[%s1231_s2] sm:$0xf]  ;;  %v749_v51 = vld [vmem:[%s1231_s2 + $0x8] sm:$0xf] }
  0x1a   :  { %336 = vmatpush.bf16.msrb.mxu3 %v698_v5  ;;  %297 = vmatpush.bf16.msrb.mxu0 %v686_v11  ;;  %v778_v44 = vor.u32 %v852_v38, %v775_v39  ;;  %v848_v46 = vld [vmem:[%s1231_s2 + $0x1c] sm:$0xf0]  ;;  %v844_v48 = vld [vmem:[%s1231_s2 + $0x4] sm:$0xf]  ;;  %v849_v52 = vld [vmem:[%s1231_s2 + $0x24] sm:$0xf0] }
  0x1b   :  { %v742_v47 = vor.u32 %v848_v46, %v741_v45  ;;  %v743_v49 = vld [vmem:[%s1231_s2 + $0x20] sm:$0xf0]  ;;  %v750_v53 = vor.u32 %v849_v52, %v749_v51  ;;  %v845_v54 = vld [vmem:[%s1231_s2 + $0xc] sm:$0xf]  ;;  %v789_v57 = vld [vmem:[%s1231_s2 + $0x50] sm:$0xf] }
  0x1c   :  { %310 = vmatpush.bf16.msrb.mxu1 %v690_v13  ;;  %v746_v50 = vor.u32 %v844_v48, %v743_v49  ;;  %v751_v55 = vld [vmem:[%s1231_s2 + $0x28] sm:$0xf0]  ;;  %v858_v58 = vld [vmem:[%s1231_s2 + $0x6c] sm:$0xf0]  ;;  %v791_v61 = vld [vmem:[%s1231_s2 + $0x70] sm:$0xf0] }
  0x1d   :  { %324 = vmatpush.bf16.msrb.mxu2 %v662_v14  ;;  %v754_v56 = vor.u32 %v845_v54, %v751_v55  ;;  %v790_v59 = vor.u32 %v858_v58, %v789_v57  ;;  %v797_v63 = vld [vmem:[%s1231_s2 + $0x58] sm:$0xf]  ;;  %v855_v1 = vld [vmem:[%s1231_s2 + $0x5c] sm:$0xf]  ;;  %v757_v5 = vld [vmem:[%s1231_s2 + $0x10] sm:$0xf] }
  0x1e   :  { %337 = vmatpush.bf16.msrb.mxu3 %v666_v18  ;;  %298 = vmatpush.bf16.msrb.mxu0 %v654_v26  ;;  %v859_v0 = vld [vmem:[%s1231_s2 + $0x74] sm:$0xf0]  ;;  %v799_v3 = vld [vmem:[%s1231_s2 + $0x78] sm:$0xf0]  ;;  %v850_v6 = vld [vmem:[%s1231_s2 + $0x2c] sm:$0xf0] }
  0x1f   :  { %v798_v2 = vor.u32 %v859_v0, %v797_v63  ;;  %v802_v4 = vor.u32 %v855_v1, %v799_v3  ;;  %v758_v7 = vor.u32 %v850_v6, %v757_v5  ;;  %v846_v8 = vld [vmem:[%s1231_s2 + $0x14] sm:$0xf]  ;;  %v765_v11 = vld [vmem:[%s1231_s2 + $0x18] sm:$0xf]  ;;  %v847_v14 = vld [vmem:[%s1231_s2 + $0x1c] sm:$0xf] }
  0x20   :  { %311 = vmatpush.bf16.msrb.mxu1 %v658_v30  ;;  %v759_v9 = vld [vmem:[%s1231_s2 + $0x30] sm:$0xf0]  ;;  %v851_v12 = vld [vmem:[%s1231_s2 + $0x34] sm:$0xf0]  ;;  %v767_v15 = vld [vmem:[%s1231_s2 + $0x38] sm:$0xf0] }
  0x21   :  { %325 = vmatpush.bf16.msrb.mxu2 %v630_v31  ;;  %v762_v10 = vor.u32 %v846_v8, %v759_v9  ;;  %v766_v13 = vor.u32 %v851_v12, %v765_v11  ;;  %v770_v16 = vor.u32 %v847_v14, %v767_v15  ;;  %v23_v17 = vld [vmem:[%s1232_s4] sm:$0xff]  ;;  %v861_v58 = vld [vmem:[%s1233_s3 + $0x8] sm:$0xff] }
  0x22   :  { %338 = vmatpush.bf16.msrb.mxu3 %v634_v33  ;;  %299 = vmatpush.bf16.msrb.mxu0 %v622_v41  ;;  %v60_v18 = vperm.slane %v23_v17, 0  ;;  %v61_v19 = vperm.slane %v23_v17, 1  ;;  %v62_v25 = vperm.slane %v23_v17, 2  ;;  %v63_v26 = vperm.slane %v23_v17, 3 }
  0x23   :  { %v64_v36 = vperm.slane %v23_v17, 4  ;;  %v65_v39 = vperm.slane %v23_v17, 5  ;;  %v66_v45 = vperm.slane %v23_v17, 6 }
  0x24   :  { %312 = vmatpush.bf16.msrb.mxu1 %v626_v42  ;;  %737 = vmatmul.msk.bf16.vlgmr.msrb.gmra.mxu2 %vm236_vm0, %v1028_v60 }
  0x25   :  { %483 = vmatpush.bf16.xpose.msra.mxu2 %v782_v37  ;;  %735 = vmatmul.msk.bf16.vlgmr.msrb.gmra.mxu0 %vm236_vm0, %v1028_v60 }
  0x26   :  { %496 = vmatpush.bf16.xpose.msra.mxu3 %v786_v40  ;;  %457 = vmatpush.bf16.xpose.msra.mxu0 %v774_v43 }
  0x27   :  { %738 = vmatmul.msk.bf16.vlgmr.msrb.gmra.mxu3 %vm236_vm0, %v1028_v60  ;;  %736 = vmatmul.msk.bf16.vlgmr.msrb.gmra.mxu1 %vm236_vm0, %v1028_v60  ;;  %v854_v60 = vld [vmem:[%s1231_s2 + $0x54] sm:$0xf] }
  0x28   :  { %470 = vmatpush.bf16.xpose.msra.mxu1 %v778_v44  ;;  %v794_v62 = vor.u32 %v854_v60, %v791_v61  ;;  %v860_v61 = vld [vmem:[%s1233_s3] sm:$0xff] }
  0x2d   :  { %484 = vmatpush.bf16.xpose.msra.mxu2 %v750_v53 }
  0x2e   :  { %458 = vmatpush.bf16.xpose.msra.mxu0 %v742_v47  ;;  %497 = vmatpush.bf16.xpose.msra.mxu3 %v754_v56  ;;  %v67_v47 = vperm.slane %v23_v17, 7 }
  0x30   :  { %471 = vmatpush.bf16.xpose.msra.mxu1 %v746_v50 }
  0x35   :  { %535 = vmatpush.bf16.xpose.msrb.mxu2 %v798_v2 }
  0x36   :  { %509 = vmatpush.bf16.xpose.msrb.mxu0 %v790_v59  ;;  %548 = vmatpush.bf16.xpose.msrb.mxu3 %v802_v4 }
  0x38   :  { %522 = vmatpush.bf16.xpose.msrb.mxu1 %v794_v62  ;;  %v862_v62 = vld [vmem:[%s1232_s4 + $0x8] ss:$0 sm:$0xff] }
  0x3d   :  { %536 = vmatpush.bf16.xpose.msrb.mxu2 %v766_v13 }
  0x3e   :  { %510 = vmatpush.bf16.xpose.msrb.mxu0 %v758_v7  ;;  %549 = vmatpush.bf16.xpose.msrb.mxu3 %v770_v16 }
  0x40   :  { %523 = vmatpush.bf16.xpose.msrb.mxu1 %v762_v10 }
  0x91   :  { %v249_v20 = vpop.f32.mrf.mxu0 }
  0x92   :  { %v250_v21 = vadd.f32 %v249_v20, %v60_v18 }
  0x94   :  { %v262_v22 = vpop.f32.mrf.mxu1  ;;  %v344_v23 = vpack.c.bf16 %v250_v21, %v250_v21 }
  0x95   :  { %v263_v24 = vadd.f32 %v262_v22, %v61_v19 }
  0x96   :  { %459 = vmatmul.bf16.vlgmr.msra.gmra.mxu0 %v344_v23  ;;  %v863_v23 = vld [vmem:[%s1232_s4 + $0x9] ss:$0 sm:$0xff] }
  0x97   :  { %v345_v27 = vpack.c.bf16 %v263_v24, %v263_v24  ;;  %v275_v28 = vpop.f32.mrf.mxu2  ;;  %586 = vmatpush.bf16.msra.mxu0 %v861_v58 }
  0x98   :  { %v288_v29 = vpop.f32.mrf.mxu3  ;;  %v276_v30 = vadd.f32 %v275_v28, %v62_v25 }
  0x99   :  { %472 = vmatmul.bf16.vlgmr.msra.gmra.mxu1 %v345_v27  ;;  %v289_v31 = vadd.f32 %v288_v29, %v63_v26  ;;  %v251_v32 = vpop.f32.mrf.mxu0 }
  0x9a   :  { %v346_v33 = vpack.c.bf16 %v276_v30, %v276_v30 }
  0x9b   :  { %v347_v34 = vpack.c.bf16 %v289_v31, %v289_v31  ;;  %587 = vmatpush.bf16.msra.mxu0 %v860_v61 }
  0x9c   :  { %v264_v35 = vpop.f32.mrf.mxu1  ;;  %485 = vmatmul.bf16.vlgmr.msra.gmra.mxu2 %v346_v33 }
  0x9d   :  { %498 = vmatmul.bf16.vlgmr.msra.gmra.mxu3 %v347_v34 }
  0x9f   :  { %v277_v37 = vpop.f32.mrf.mxu2 }
  0xa0   :  { %v290_v38 = vpop.f32.mrf.mxu3 }
  0xa2   :  { %v301_v40 = vpop.f32.mrf.mxu0 }
  0xa3   :  { %v302_v41 = vadd.f32 %v301_v40, %v64_v36 }
  0xa4   :  { %v314_v42 = vpop.f32.mrf.mxu1 }
  0xa5   :  { %v315_v43 = vadd.f32 %v314_v42, %v65_v39  ;;  %v348_v44 = vpack.c.bf16 %v302_v41, %v302_v41 }
  0xa7   :  { %v349_v46 = vpack.c.bf16 %v315_v43, %v315_v43  ;;  %511 = vmatmul.bf16.vlgmr.msrb.gmra.mxu0 %v348_v44  ;;  %v327_v48 = vpop.f32.mrf.mxu2 }
  0xa8   :  { %v328_v49 = vadd.f32 %v327_v48, %v66_v45 }
  0xa9   :  { %524 = vmatmul.bf16.vlgmr.msrb.gmra.mxu1 %v349_v46 }
  0xaa   :  { %v340_v50 = vpop.f32.mrf.mxu3  ;;  %v303_v52 = vpop.f32.mrf.mxu0  ;;  %v350_v53 = vpack.c.bf16 %v328_v49, %v328_v49 }
  0xab   :  { %v341_v51 = vadd.f32 %v340_v50, %v67_v47 }
  0xac   :  { %v316_v54 = vpop.f32.mrf.mxu1  ;;  %537 = vmatmul.bf16.vlgmr.msrb.gmra.mxu2 %v350_v53 }
  0xad   :  { %v351_v55 = vpack.c.bf16 %v341_v51, %v341_v51 }
  0xaf   :  { %550 = vmatmul.bf16.vlgmr.msrb.gmra.mxu3 %v351_v55  ;;  %v329_v56 = vpop.f32.mrf.mxu2 }
  0xb2   :  { %v342_v57 = vpop.f32.mrf.mxu3 }
 0x113   :  { %v460_v59 = vpop.f32.mrf.mxu0 }
 0x114   :  { %v461_v63 = vadd.f32 %v862_v62, %v460_v59 }
 0x116   :  { %v473_v60 = vpop.f32.mrf.mxu1 }
 0x117   :  { %v474_v2 = vadd.f32 %v473_v60, %v461_v63 }
 0x11b   :  { %v462_v0 = vpop.f32.mrf.mxu0 }
 0x11e   :  { %v475_v1 = vpop.f32.mrf.mxu1 }
 0x11f   :  { %v486_v3 = vpop.f32.mrf.mxu2 }
 0x120   :  { %v499_v4 = vpop.f32.mrf.mxu3  ;;  %v487_v5 = vadd.f32 %v486_v3, %v474_v2 }
 0x122   :  { %v500_v8 = vadd.f32 %v499_v4, %v487_v5 }
 0x124   :  { %v512_v6 = vpop.f32.mrf.mxu0 }
 0x125   :  { %v513_v11 = vadd.f32 %v512_v6, %v500_v8 }
 0x126   :  { %v525_v7 = vpop.f32.mrf.mxu1 }
 0x127   :  { %v488_v9 = vpop.f32.mrf.mxu2  ;;  %v526_v14 = vadd.f32 %v525_v7, %v513_v11 }
 0x128   :  { %v501_v10 = vpop.f32.mrf.mxu3 }
 0x12c   :  { %v514_v12 = vpop.f32.mrf.mxu0 }
 0x12e   :  { %v527_v13 = vpop.f32.mrf.mxu1 }
 0x12f   :  { %v538_v15 = vpop.f32.mrf.mxu2 }
 0x130   :  { %v539_v16 = vadd.f32 %v538_v15, %v526_v14 }
 0x132   :  { %v551_v17 = vpop.f32.mrf.mxu3 }
 0x133   :  { %v552_v18 = vadd.f32 %v551_v17, %v539_v16 }
 0x135   :  { %v555_v19 = vmax.f32 %v552_v18, 0.0 }
 0x137   :  { %v556_v20 = vpack.c.bf16 %v555_v19, %v555_v19  ;;  %594 = vst.msk [vmem:[%s1234_s6] sm:$0xff] %vm576_vm1, %v555_v19  ;;  %v540_v21 = vpop.f32.mrf.mxu2 }
 0x139   :  { %811 = vmatmul.msk.bf16.vlgmr.msra.gmra.mxu0 %vm576_vm1, %v556_v20 }
 0x13a   :  { %v553_v22 = vpop.f32.mrf.mxu3 }
 0x1b6   :  { %v589_v24 = vpop.f32.mrf.mxu0 }
 0x1b7   :  { %v590_v25 = vadd.f32 %v863_v23, %v589_v24 }
 0x1b9   :  { %593 = vst [vmem:[%s1235_s5] sm:$0xff] %v590_v25 }
 0x1be   :  { %v591_v26 = vpop.f32.mrf.mxu0 }

</bundles_post_ra>
